<compile_context>
chip_gen: v6e
topology: v6e:2x2x1
jax: 0.10.0
libtpu: 0.0.40
codegen_flags: <defaults>
</compile_context>

<pallas_src>
import jax
import jax.numpy as jnp
from jax import lax
from jax.experimental import pallas as pl
from jax.experimental.pallas import tpu as pltpu

KERNEL_SIZES = (2, 3, 4)
LANE = 128
SUBLANE = 8
NEG_INF = -1e30


def _round_up(x, m):
    return (x + m - 1) // m * m


def _cdiv(a, b):
    return -(-a // b)


def _vmem_budget():
    """(x-tile target bytes, vmem_limit_bytes), generation aware."""
    try:
        info = pltpu.get_tpu_info()
        cap = getattr(info, "vmem_capacity_bytes", None) or (64 << 20)
    except Exception:  # no TPU info available -> conservative (v7x-safe)
        cap = 64 << 20
    if cap >= (100 << 20):          # v5e / v6e: 128 MiB physical VMEM
        return 12 << 20, 96 << 20
    return 4 << 20, 48 << 20        # v7x-class: 64 MiB physical VMEM


def _choose_tiles(batch, seq_pad, d, x_itemsize, target_bytes, chunk_batch=None):
    """Returns (tb, cb): batch rows per grid tile, batch rows per inner chunk."""
    if chunk_batch is not None:
        cb = int(chunk_batch)
    elif batch <= SUBLANE:
        cb = batch
    else:
        cb = (2048 // seq_pad) // SUBLANE * SUBLANE   # ~2k flattened rows/chunk
        cb = max(SUBLANE, min(cb, 64))
    if batch <= cb:
        return batch, batch                            # single tile, single chunk
    row_bytes = seq_pad * d * x_itemsize
    tb_max = max(cb, (target_bytes // row_bytes) // cb * cb)
    if batch > 2 * cb:
        # Keep >= 2 parallel grid steps so both v7x TensorCores get work.
        tb_max = min(tb_max, _round_up(_cdiv(batch, 2), cb))
    steps = _cdiv(batch, tb_max)
    tb = _round_up(_cdiv(batch, steps), cb)            # small padded remainder
    return int(tb), int(cb)


def _pack_params(params, embed_dim, kernel_num, num_labels, compute_dtype):
    """Pack per-branch conv weights into truncated, lane-dense per-tap matrices.

    Branches are ordered by DESCENDING kernel size so tap i only needs columns
    for the branches whose kernel size exceeds i.
    """
    c = kernel_num
    order = tuple(sorted(KERNEL_SIZES, reverse=True))          # (4, 3, 2)
    feat = len(order) * c
    c_pack = _round_up(feat, LANE)
    l_pad = _round_up(num_labels, LANE)
    max_k = order[0]

    w_taps = []
    for i in range(max_k):
        n_i = sum(1 for k in order if k > i)                   # branches using tap i
        width = _round_up(n_i * c, LANE)
        wi = jnp.zeros((embed_dim, width), jnp.float32)
        for g, k in enumerate(order):
            if k > i:
                wi = wi.at[:, g * c:(g + 1) * c].set(params[f'w{k}'][:, i, :].T)
        w_taps.append(wi.astype(compute_dtype))                # big streams downcast

    b_pack = jnp.zeros((1, c_pack), jnp.float32)
    for g, k in enumerate(order):
        b_pack = b_pack.at[:, g * c:(g + 1) * c].set(params[f'b{k}'])

    # PyTorch concatenates pooled features in KERNEL_SIZES order -> permute the
    # classifier's input columns to the descending-k packing order.
    wc_pack = jnp.zeros((c_pack, l_pad), jnp.float32)
    for g, k in enumerate(order):
        src = KERNEL_SIZES.index(k) * c
        wc_pack = wc_pack.at[g * c:(g + 1) * c, :num_labels].set(
            params['wc'][:, src:src + c].T)
    bc_pack = jnp.zeros((1, l_pad), jnp.float32)
    bc_pack = bc_pack.at[:, :num_labels].set(params['bc'])
    return w_taps, b_pack, wc_pack, bc_pack


def _time_mask(seq_orig, seq_pad, tail_start, kernel_num, c_pack):
    """(tail_len, C_pack) additive mask: 0 on valid conv rows, NEG_INF on the
    per-branch invalid tail rows and on the seq padding."""
    c = kernel_num
    order = tuple(sorted(KERNEL_SIZES, reverse=True))
    tail_len = seq_pad - tail_start
    t = jnp.arange(tail_start, seq_pad, dtype=jnp.int32)[:, None]
    mask = jnp.zeros((tail_len, c_pack), jnp.float32)
    for g, k in enumerate(order):
        invalid = jnp.where(t >= (seq_orig - k + 1), NEG_INF, 0.0)      # (tail_len, 1)
        mask = mask.at[:, g * c:(g + 1) * c].set(
            jnp.broadcast_to(invalid, (tail_len, c)))
    return mask


def _make_kernel(max_k, cb, nchunks, s_pad, tail_start, compute_dtype):
    """Fused KimCNN forward: packed per-tap matmuls, roll-align, masked
    time-max (chunked over batch), ReLU, classifier matmul."""

    def kernel(x_ref, *refs):
        w_refs = refs[:max_k]
        b_ref, mask_ref, wc_ref, bc_ref, out_ref, pooled_ref = refs[max_k:]
        c_pack = pooled_ref.shape[1]
        d = x_ref.shape[2]
        rows_c = cb * s_pad                       # flattened rows per chunk

        def process_chunk(start):
            # (cb, S_pad, D) -> (cb*S_pad, D): free view since S_pad % 8 == 0.
            x2 = x_ref[pl.ds(start, cb)].reshape(rows_c, d).astype(compute_dtype)

            # Tap 0 seeds the accumulator (all branches use tap 0 -> C_pack wide).
            conv = jnp.dot(x2, w_refs[0][...], preferred_element_type=jnp.float32)
            for i in range(1, max_k):             # static unroll over taps
                wi = w_refs[i][...]
                ci = wi.shape[1]                  # truncated width of tap i
                y = jnp.dot(x2, wi, preferred_element_type=jnp.float32)
                # Align tap i: conv[t] += y[t + i].  Circular wrap / batch-row
                # crossings only land in rows the NEG_INF tail mask removes.
                y = pltpu.roll(y, shift=rows_c - i, axis=0)
                if ci == c_pack:
                    conv = conv + y
                else:                             # tap feeds only leading branches
                    conv = jnp.concatenate([conv[:, :ci] + y, conv[:, ci:]], axis=1)

            conv = conv.reshape(cb, s_pad, c_pack)
            # Mask only the tail rows that can be invalid, then max over time.
            tail = conv[:, tail_start:, :] + mask_ref[...][None, :, :]
            pooled = jnp.max(tail, axis=1)
            if tail_start > 0:
                pooled = jnp.maximum(pooled,
                                     jnp.max(conv[:, :tail_start, :], axis=1))
            pooled_ref[pl.ds(start, cb), :] = pooled

        if nchunks == 1:
            process_chunk(0)
        else:
            def body(j, carry):
                process_chunk(pl.multiple_of(j * cb, cb))
                return carry
            lax.fori_loop(0, nchunks, body, 0)

        # Bias + ReLU after the pool (ReLU monotone, bias constant over time).
        act = jnp.maximum(pooled_ref[...] + b_ref[...], 0.0)
        # Dropout: identity (eval mode).
        logits = jnp.dot(act, wc_ref[...],
                         preferred_element_type=jnp.float32) + bc_ref[...]
        out_ref[...] = logits.astype(out_ref.dtype)

    return kernel


def kimcnn_forward(x, params, kernel_num, num_labels,
                   compute_dtype=jnp.float32, chunk_batch=None):
    """x: (B, S, D).  Returns logits (B, num_labels) float32.

    compute_dtype controls the conv-matmul operand dtype (accumulation stays
    f32); bf16 is recommended on v5e (full-rate MXU, ~0.8 TB/s HBM)."""
    batch, seq_len, embed_dim = x.shape
    max_k = max(KERNEL_SIZES)
    assert seq_len >= max_k

    w_taps, b_pack, wc_pack, bc_pack = _pack_params(
        params, embed_dim, kernel_num, num_labels, compute_dtype)
    c_pack, l_pad = wc_pack.shape

    # Pad S so (B,S)<->(B*S) reshapes are layout-free; mask covers the pad.
    s_align = SUBLANE if x.dtype.itemsize == 4 else 2 * SUBLANE
    s_pad = _round_up(seq_len, s_align)
    tail_start = max(0, (seq_len - max_k + 1) // SUBLANE * SUBLANE)
    tail_len = s_pad - tail_start
    mask = _time_mask(seq_len, s_pad, tail_start, kernel_num, c_pack)

    target_bytes, vmem_limit = _vmem_budget()
    tb, cb = _choose_tiles(batch, s_pad, embed_dim, x.dtype.itemsize,
                           target_bytes, chunk_batch)
    b_pad = _round_up(batch, tb)
    nchunks = tb // cb

    # No dtype cast and no D pad of x in the wrapper (no extra HBM round trip).
    # Explicit ZERO pad of batch/seq only when required (padded rows must be
    # finite so roll-wrap cannot leak NaN/Inf through the mask).
    x_in = x
    if b_pad != batch or s_pad != seq_len:
        x_in = jnp.pad(x, ((0, b_pad - batch), (0, s_pad - seq_len), (0, 0)))

    kernel = _make_kernel(max_k, cb, nchunks, s_pad, tail_start, compute_dtype)

    in_specs = [pl.BlockSpec((tb, s_pad, embed_dim), lambda i: (i, 0, 0))]   # x
    in_specs += [pl.BlockSpec(tuple(w.shape), lambda i: (0, 0))              # taps
                 for w in w_taps]
    in_specs += [
        pl.BlockSpec((1, c_pack), lambda i: (0, 0)),            # conv bias
        pl.BlockSpec((tail_len, c_pack), lambda i: (0, 0)),     # tail time-mask
        pl.BlockSpec((c_pack, l_pad), lambda i: (0, 0)),        # W_cls^T
        pl.BlockSpec((1, l_pad), lambda i: (0, 0)),             # b_cls
    ]

    out = pl.pallas_call(
        kernel,
        out_shape=jax.ShapeDtypeStruct((b_pad, l_pad), jnp.float32),
        grid=(b_pad // tb,),
        in_specs=in_specs,
        out_specs=pl.BlockSpec((tb, l_pad), lambda i: (i, 0)),
        scratch_shapes=[pltpu.VMEM((tb, c_pack), jnp.float32)],  # pooled acc
        compiler_params=pltpu.CompilerParams(
            dimension_semantics=("parallel",),
            vmem_limit_bytes=vmem_limit),
    )(x_in, *w_taps, b_pack, mask, wc_pack, bc_pack)

    return out[:batch, :num_labels]


def init_params(key, embed_dim, kernel_num, kernel_sizes, num_labels):
    """Deterministic synthetic parameters matching the nn.Module shapes."""
    keys = jax.random.split(key, 2 * len(kernel_sizes) + 2)
    params = {}
    for idx, k in enumerate(kernel_sizes):
        fan_in = k * embed_dim
        bound = 1.0 / jnp.sqrt(fan_in)
        params[f'w{k}'] = jax.random.uniform(
            keys[2 * idx], (kernel_num, k, embed_dim),
            minval=-bound, maxval=bound, dtype=jnp.float32)
        params[f'b{k}'] = jax.random.uniform(
            keys[2 * idx + 1], (1, kernel_num),
            minval=-bound, maxval=bound, dtype=jnp.float32)
    feat = len(kernel_sizes) * kernel_num
    bound = 1.0 / jnp.sqrt(feat)
    params['wc'] = jax.random.uniform(
        keys[-2], (num_labels, feat), minval=-bound, maxval=bound,
        dtype=jnp.float32)
    params['bc'] = jax.random.uniform(
        keys[-1], (1, num_labels), minval=-bound, maxval=bound,
        dtype=jnp.float32)
    return params


def kimcnn_reference(x, params):
    """Pure-JAX reference (high-precision matmuls) for correctness checking."""
    hi = jax.lax.Precision.HIGHEST
    pooled_parts = []
    for k in KERNEL_SIZES:
        w = params[f'w{k}']                       # (C, k, D)
        b = params[f'b{k}'][0]                    # (C,)
        L = x.shape[1] - k + 1
        conv = sum(
            jnp.einsum('bsd,cd->bsc', x[:, i:i + L, :], w[:, i, :], precision=hi)
            for i in range(k)) + b[None, None, :]
        pooled_parts.append(jnp.max(jnp.maximum(conv, 0.0), axis=1))
    pooled = jnp.concatenate(pooled_parts, axis=1)
    return jnp.dot(pooled, params['wc'].T, precision=hi) + params['bc'][0][None, :]


if __name__ == "__main__":
    key = jax.random.PRNGKey(0)

    # --- Test 1: tiny shapes (single 128-lane feature group, single chunk) ---
    B, S, D = 2, 8, 32          # batch, seq_len (=embed_num), embed_dim
    kernel_num, num_labels = 3, 6
    kx, kp = jax.random.split(key)
    x = jax.random.normal(kx, (B, S, D), dtype=jnp.float32)
    params = init_params(kp, D, kernel_num, KERNEL_SIZES, num_labels)
    ref = kimcnn_reference(x, params)

    logits = jax.block_until_ready(
        kimcnn_forward(x, params, kernel_num, num_labels))
    assert logits.shape == (B, num_labels)
    assert jnp.allclose(logits, ref, atol=2e-2, rtol=2e-2)

    # bf16 tap weights + in-kernel bf16 cast of x, f32 accumulation.
    logits_bf16 = jax.block_until_ready(
        kimcnn_forward(x, params, kernel_num, num_labels,
                       compute_dtype=jnp.bfloat16))
    assert logits_bf16.shape == (B, num_labels)
    assert jnp.allclose(logits_bf16, ref, atol=1.5e-1, rtol=1.5e-1)

    # --- Test 2: exercises >128 feature lanes (truncated-tap concat path),
    #     seq padding + head/tail mask split, batch tiling (2 grid steps) and
    #     the inner chunk loop (2 chunks per tile). ---
    B2, S2, D2 = 20, 20, 32
    kernel_num2, num_labels2 = 48, 6
    kx2, kp2 = jax.random.split(kp)
    x2 = jax.random.normal(kx2, (B2, S2, D2), dtype=jnp.float32)
    params2 = init_params(kp2, D2, kernel_num2, KERNEL_SIZES, num_labels2)
    ref2 = kimcnn_reference(x2, params2)

    logits2 = jax.block_until_ready(
        kimcnn_forward(x2, params2, kernel_num2, num_labels2, chunk_batch=8))
    assert logits2.shape == (B2, num_labels2)
    assert jnp.allclose(logits2, ref2, atol=2e-2, rtol=2e-2)

    print("KERNEL_OK")
</pallas_src>

<mosaic_0001>
module attributes {stable_mosaic.version = 11 : i64} {
  func.func @kernel(%arg0: i32, %arg1: memref<2x8x32xf32, #tpu.memory_space<vmem>>, %arg2: memref<32x128xf32, #tpu.memory_space<vmem>>, %arg3: memref<32x128xf32, #tpu.memory_space<vmem>>, %arg4: memref<32x128xf32, #tpu.memory_space<vmem>>, %arg5: memref<32x128xf32, #tpu.memory_space<vmem>>, %arg6: memref<1x128xf32, #tpu.memory_space<vmem>>, %arg7: memref<8x128xf32, #tpu.memory_space<vmem>>, %arg8: memref<128x128xf32, #tpu.memory_space<vmem>>, %arg9: memref<1x128xf32, #tpu.memory_space<vmem>>, %arg10: memref<2x128xf32, #tpu.memory_space<vmem>>, %arg11: memref<2x128xf32, #tpu.memory_space<vmem>>) attributes {dimension_semantics = [#tpu.dimension_semantics<parallel>], iteration_bounds = array<i64: 1>, scalar_prefetch = 0 : i64, scratch_operands = 1 : i64, tpu.core_type = #tpu.core_type<tc>, window_params = [{transform_indices = @transform_0, window_bounds = array<i64: 2, 8, 32>}, {pipeline_mode = #tpu.pipeline_mode<synchronous>, transform_indices = @transform_1, window_bounds = array<i64: 32, 128>}, {pipeline_mode = #tpu.pipeline_mode<synchronous>, transform_indices = @transform_2, window_bounds = array<i64: 32, 128>}, {pipeline_mode = #tpu.pipeline_mode<synchronous>, transform_indices = @transform_3, window_bounds = array<i64: 32, 128>}, {pipeline_mode = #tpu.pipeline_mode<synchronous>, transform_indices = @transform_4, window_bounds = array<i64: 32, 128>}, {pipeline_mode = #tpu.pipeline_mode<synchronous>, transform_indices = @transform_5, window_bounds = array<i64: 1, 128>}, {pipeline_mode = #tpu.pipeline_mode<synchronous>, transform_indices = @transform_6, window_bounds = array<i64: 8, 128>}, {pipeline_mode = #tpu.pipeline_mode<synchronous>, transform_indices = @transform_7, window_bounds = array<i64: 128, 128>}, {pipeline_mode = #tpu.pipeline_mode<synchronous>, transform_indices = @transform_8, window_bounds = array<i64: 1, 128>}, {transform_indices = @transform_9, window_bounds = array<i64: 2, 128>}]} {
    %c0 = arith.constant 0 : index
    %c0_0 = arith.constant 0 : index
    %c0_1 = arith.constant 0 : index
    %0 = vector.load %arg1[%c0, %c0_0, %c0_1] : memref<2x8x32xf32, #tpu.memory_space<vmem>>, vector<2x8x32xf32>
    %1 = vector.shape_cast %0 : vector<2x8x32xf32> to vector<16x32xf32>
    %c0_2 = arith.constant 0 : index
    %c0_3 = arith.constant 0 : index
    %2 = vector.load %arg2[%c0_2, %c0_3] : memref<32x128xf32, #tpu.memory_space<vmem>>, vector<32x128xf32>
    %cst = arith.constant dense<0.000000e+00> : vector<16x128xf32>
    %3 = tpu.matmul %1, %2, %cst {dimension_numbers = #tpu.dot_dimension_numbers<[1], [0], [0], [1], [0, 0, 1, 1], [], []>} : vector<16x32xf32>, vector<32x128xf32>, vector<16x128xf32> -> vector<16x128xf32>
    %c0_4 = arith.constant 0 : index
    %c0_5 = arith.constant 0 : index
    %4 = vector.load %arg3[%c0_4, %c0_5] : memref<32x128xf32, #tpu.memory_space<vmem>>, vector<32x128xf32>
    %cst_6 = arith.constant dense<0.000000e+00> : vector<16x128xf32>
    %5 = tpu.matmul %1, %4, %cst_6 {dimension_numbers = #tpu.dot_dimension_numbers<[1], [0], [0], [1], [0, 0, 1, 1], [], []>} : vector<16x32xf32>, vector<32x128xf32>, vector<16x128xf32> -> vector<16x128xf32>
    %c15_i32 = arith.constant 15 : i32
    %6 = tpu.dynamic_rotate %5 by %c15_i32 dim 0 : vector<16x128xf32>, i32 -> vector<16x128xf32>
    %7 = arith.addf %3, %6 : vector<16x128xf32>
    %c0_7 = arith.constant 0 : index
    %c0_8 = arith.constant 0 : index
    %8 = vector.load %arg4[%c0_7, %c0_8] : memref<32x128xf32, #tpu.memory_space<vmem>>, vector<32x128xf32>
    %cst_9 = arith.constant dense<0.000000e+00> : vector<16x128xf32>
    %9 = tpu.matmul %1, %8, %cst_9 {dimension_numbers = #tpu.dot_dimension_numbers<[1], [0], [0], [1], [0, 0, 1, 1], [], []>} : vector<16x32xf32>, vector<32x128xf32>, vector<16x128xf32> -> vector<16x128xf32>
    %c14_i32 = arith.constant 14 : i32
    %10 = tpu.dynamic_rotate %9 by %c14_i32 dim 0 : vector<16x128xf32>, i32 -> vector<16x128xf32>
    %11 = arith.addf %7, %10 : vector<16x128xf32>
    %c0_10 = arith.constant 0 : index
    %c0_11 = arith.constant 0 : index
    %12 = vector.load %arg5[%c0_10, %c0_11] : memref<32x128xf32, #tpu.memory_space<vmem>>, vector<32x128xf32>
    %cst_12 = arith.constant dense<0.000000e+00> : vector<16x128xf32>
    %13 = tpu.matmul %1, %12, %cst_12 {dimension_numbers = #tpu.dot_dimension_numbers<[1], [0], [0], [1], [0, 0, 1, 1], [], []>} : vector<16x32xf32>, vector<32x128xf32>, vector<16x128xf32> -> vector<16x128xf32>
    %c13_i32 = arith.constant 13 : i32
    %14 = tpu.dynamic_rotate %13 by %c13_i32 dim 0 : vector<16x128xf32>, i32 -> vector<16x128xf32>
    %15 = arith.addf %11, %14 : vector<16x128xf32>
    %16 = vector.shape_cast %15 : vector<16x128xf32> to vector<2x8x128xf32>
    %c0_13 = arith.constant 0 : index
    %c0_14 = arith.constant 0 : index
    %17 = vector.load %arg7[%c0_13, %c0_14] : memref<8x128xf32, #tpu.memory_space<vmem>>, vector<8x128xf32>
    %18 = vector.shape_cast %17 : vector<8x128xf32> to vector<1x8x128xf32>
    %19 = vector.broadcast %18 : vector<1x8x128xf32> to vector<2x8x128xf32>
    %20 = arith.addf %16, %19 : vector<2x8x128xf32>
    %cst_15 = arith.constant dense<0xFF800000> : vector<2x128xf32>
    %21 = vector.multi_reduction <maximumf>, %20, %cst_15 [1] : vector<2x8x128xf32> to vector<2x128xf32>
    %c0_16 = arith.constant 0 : index
    %c0_17 = arith.constant 0 : index
    %22 = vector.load %arg11[%c0_16, %c0_17] : memref<2x128xf32, #tpu.memory_space<vmem>>, vector<2x128xf32>
    tpu.vector_store %arg11[%c0_16, %c0_17], %21 {strides = array<i32>} : memref<2x128xf32, #tpu.memory_space<vmem>>, vector<2x128xf32>,
    %c0_18 = arith.constant 0 : index
    %c0_19 = arith.constant 0 : index
    %23 = vector.load %arg11[%c0_18, %c0_19] : memref<2x128xf32, #tpu.memory_space<vmem>>, vector<2x128xf32>
    %c0_20 = arith.constant 0 : index
    %c0_21 = arith.constant 0 : index
    %24 = vector.load %arg6[%c0_20, %c0_21] : memref<1x128xf32, #tpu.memory_space<vmem>>, vector<1x128xf32>
    %25 = vector.broadcast %24 : vector<1x128xf32> to vector<2x128xf32>
    %26 = arith.addf %23, %25 : vector<2x128xf32>
    %cst_22 = arith.constant 0.000000e+00 : f32
    %27 = vector.broadcast %cst_22 : f32 to vector<2x128xf32>
    %28 = arith.maximumf %26, %27 : vector<2x128xf32>
    %c0_23 = arith.constant 0 : index
    %c0_24 = arith.constant 0 : index
    %29 = vector.load %arg8[%c0_23, %c0_24] : memref<128x128xf32, #tpu.memory_space<vmem>>, vector<128x128xf32>
    %cst_25 = arith.constant dense<0.000000e+00> : vector<2x128xf32>
    %30 = tpu.matmul %28, %29, %cst_25 {dimension_numbers = #tpu.dot_dimension_numbers<[1], [0], [0], [1], [0, 0, 1, 1], [], []>} : vector<2x128xf32>, vector<128x128xf32>, vector<2x128xf32> -> vector<2x128xf32>
    %c0_26 = arith.constant 0 : index
    %c0_27 = arith.constant 0 : index
    %31 = vector.load %arg9[%c0_26, %c0_27] : memref<1x128xf32, #tpu.memory_space<vmem>>, vector<1x128xf32>
    %32 = vector.broadcast %31 : vector<1x128xf32> to vector<2x128xf32>
    %33 = arith.addf %30, %32 : vector<2x128xf32>
    %c0_28 = arith.constant 0 : index
    %c0_29 = arith.constant 0 : index
    %34 = vector.load %arg10[%c0_28, %c0_29] : memref<2x128xf32, #tpu.memory_space<vmem>>, vector<2x128xf32>
    tpu.vector_store %arg10[%c0_28, %c0_29], %33 {strides = array<i32>} : memref<2x128xf32, #tpu.memory_space<vmem>>, vector<2x128xf32>,
    return
  }
  func.func @transform_0(%arg0: i32) -> (i32, i32, i32) {
    %c0_i32 = arith.constant 0 : i32
    %c0_i32_0 = arith.constant 0 : i32
    %c0_i32_1 = arith.constant 0 : i32
    return %arg0, %c0_i32, %c0_i32_0 : i32, i32, i32
  }
  func.func @transform_1(%arg0: i32) -> (i32, i32) {
    %c0_i32 = arith.constant 0 : i32
    %c0_i32_0 = arith.constant 0 : i32
    %c0_i32_1 = arith.constant 0 : i32
    return %c0_i32, %c0_i32_0 : i32, i32
  }
  func.func @transform_2(%arg0: i32) -> (i32, i32) {
    %c0_i32 = arith.constant 0 : i32
    %c0_i32_0 = arith.constant 0 : i32
    %c0_i32_1 = arith.constant 0 : i32
    return %c0_i32, %c0_i32_0 : i32, i32
  }
  func.func @transform_3(%arg0: i32) -> (i32, i32) {
    %c0_i32 = arith.constant 0 : i32
    %c0_i32_0 = arith.constant 0 : i32
    %c0_i32_1 = arith.constant 0 : i32
    return %c0_i32, %c0_i32_0 : i32, i32
  }
  func.func @transform_4(%arg0: i32) -> (i32, i32) {
    %c0_i32 = arith.constant 0 : i32
    %c0_i32_0 = arith.constant 0 : i32
    %c0_i32_1 = arith.constant 0 : i32
    return %c0_i32, %c0_i32_0 : i32, i32
  }
  func.func @transform_5(%arg0: i32) -> (i32, i32) {
    %c0_i32 = arith.constant 0 : i32
    %c0_i32_0 = arith.constant 0 : i32
    %c0_i32_1 = arith.constant 0 : i32
    return %c0_i32, %c0_i32_0 : i32, i32
  }
  func.func @transform_6(%arg0: i32) -> (i32, i32) {
    %c0_i32 = arith.constant 0 : i32
    %c0_i32_0 = arith.constant 0 : i32
    %c0_i32_1 = arith.constant 0 : i32
    return %c0_i32, %c0_i32_0 : i32, i32
  }
  func.func @transform_7(%arg0: i32) -> (i32, i32) {
    %c0_i32 = arith.constant 0 : i32
    %c0_i32_0 = arith.constant 0 : i32
    %c0_i32_1 = arith.constant 0 : i32
    return %c0_i32, %c0_i32_0 : i32, i32
  }
  func.func @transform_8(%arg0: i32) -> (i32, i32) {
    %c0_i32 = arith.constant 0 : i32
    %c0_i32_0 = arith.constant 0 : i32
    %c0_i32_1 = arith.constant 0 : i32
    return %c0_i32, %c0_i32_0 : i32, i32
  }
  func.func @transform_9(%arg0: i32) -> (i32, i32) {
    %c0_i32 = arith.constant 0 : i32
    %c0_i32_0 = arith.constant 0 : i32
    return %arg0, %c0_i32 : i32, i32
  }
}

</mosaic_0001>

<bundles_post_ra>
// kernel: tpu_custom_call.1
= control target key start
LH: loop header
LB: loop body
LE: loop exit
PB: predicated region body
PF: predicated region fallthrough
CT: control target
= control target key end

     0   :  { %14 = vsyncpa [#allocation4], 0  ;;  %s1012_s0 = inlined_call_operand.hbm [shape: f32[2,8,32], index: 0, kind: input, shape index: {}]   ;;  %s1013_s1 = inlined_call_operand.hbm [shape: f32[32,128], index: 1, kind: input, shape index: {}]   ;;  %s1014_s2 = inlined_call_operand.hbm [shape: f32[32,128], index: 2, kind: input, shape index: {}]   ;;  %s1015_s3 = inlined_call_operand.hbm [shape: f32[32,128], index: 3, kind: input, shape index: {}]   ;;  %s1016_s4 = inlined_call_operand.hbm [shape: f32[32,128], index: 4, kind: input, shape index: {}]   ;;  %s1017_s5 = inlined_call_operand.vmem [shape: f32[1,128], index: 5, kind: input, shape index: {}]   ;;  %s1018_s6 = inlined_call_operand.vmem [shape: f32[8,128], index: 6, kind: input, shape index: {}]   ;;  %s1019_s7 = inlined_call_operand.hbm [shape: f32[128,128], index: 7, kind: input, shape index: {}]   ;;  %s1020_s8 = inlined_call_operand.vmem [shape: f32[1,128], index: 8, kind: input, shape index: {}]   ;;  %s1021_s9 = inlined_call_operand.hbm [shape: f32[2,128], index: 9, kind: output, shape index: {}]  }
   0x1   :  { %15 = vsyncpa [#allocation7], 0 }
   0x2   :  { %16 = vsyncpa [#allocation10], 0 }
   0x3   :  { %17 = vsyncpa [#allocation13], 0 }
   0x4   :  { %18 = vsyncpa [#allocation5], 0  ;;  %s895_s30 = smov [#allocation6]   ;;  %s896_s11 = smov [#allocation9]  }
   0x5   :  { %s36_s10 = sshll.u32 %s895_s30, 4  ;;  %s60_s12 = sshll.u32 %s896_s11, 4  ;;  %s37_s10 = int_to_ptr.vmem [resolvable:$true] %s36_s10  ;;  %s61_s12 = int_to_ptr.vmem [resolvable:$true] %s60_s12 }
   0x6   :  { %s753_s13 = scalar_lea.vmem %s37_s10, 512  ;;  %p758_p1 = scmp.lt.s32.totalorder %s37_s10, %s37_s10 }
   0x7   :  { %p754_p0 = scmp.ne.s32.totalorder %s37_s10, %s753_s13  ;;  %p759_p2 = scmp.lt.s32.totalorder %s753_s13, %s753_s13 }
   0x9   :  { %p760_p3 = por %p759_p2, %p758_p1 }
   0xb   :  { %p761_p4 = pnand %p760_p3, %p754_p0 }
   0xd   :  { %764 = shalt.err (!%p761_p4)
}
   0xe   :  { %s897_s14 = smov 128   ;;  %s898_s15 = smov 8  }
   0xf   :  { %42 = dma.hbm_to_vmem [thread:$0]  %s1013_s1, 512, %s37_s10, [#allocation7], %s897_s14, %s897_s14, %s898_s15  }
  0x10   :  { %s773_s18 = scalar_lea.vmem %s61_s12, 512  ;;  %p778_p6 = scmp.lt.s32.totalorder %s61_s12, %s61_s12 }
  0x11   :  { %p774_p5 = scmp.ne.s32.totalorder %s61_s12, %s773_s18  ;;  %p779_p7 = scmp.lt.s32.totalorder %s773_s18, %s773_s18 }
  0x13   :  { %p780_p8 = por %p779_p7, %p778_p6 }
  0x15   :  { %p781_p9 = pnand %p780_p8, %p774_p5 }
  0x17   :  { %784 = shalt.err (!%p781_p9)
}
  0x18   :  { %66 = dma.hbm_to_vmem [thread:$0]  %s1015_s3, 512, %s61_s12, [#allocation10], %s897_s14, %s897_s14, %s898_s15  }
  0x19   :  { %s899_s21 = smov [#allocation3]   ;;  %s900_s23 = smov [#allocation8]  }
  0x1a   :  { %s24_s22 = sshll.u32 %s899_s21, 4  ;;  %s48_s24 = sshll.u32 %s900_s23, 4  ;;  %s25_s22 = int_to_ptr.vmem [resolvable:$true] %s24_s22  ;;  %s49_s24 = int_to_ptr.vmem [resolvable:$true] %s48_s24 }
  0x1b   :  { %s793_s1 = scalar_lea.vmem %s25_s22, 256  ;;  %p798_p11 = scmp.lt.s32.totalorder %s25_s22, %s25_s22 }
  0x1c   :  { %p794_p10 = scmp.ne.s32.totalorder %s25_s22, %s793_s1  ;;  %p799_p12 = scmp.lt.s32.totalorder %s793_s1, %s793_s1 }
  0x1e   :  { %p800_p13 = por %p799_p12, %p798_p11 }
  0x20   :  { %p801_p0 = pnand %p800_p13, %p794_p10 }
  0x22   :  { %804 = shalt.err (!%p801_p0)
}
  0x23   :  { %30 = dma.hbm_to_vmem [thread:$0]  %s1012_s0, 256, %s25_s22, [#allocation4], %s897_s14, %s897_s14, %s898_s15  }
  0x24   :  { %s813_s3 = scalar_lea.vmem %s49_s24, 512  ;;  %p818_p2 = scmp.lt.s32.totalorder %s49_s24, %s49_s24 }
  0x25   :  { %p814_p1 = scmp.ne.s32.totalorder %s49_s24, %s813_s3  ;;  %p819_p3 = scmp.lt.s32.totalorder %s813_s3, %s813_s3 }
  0x27   :  { %p820_p4 = por %p819_p3, %p818_p2 }
  0x29   :  { %p821_p5 = pnand %p820_p4, %p814_p1 }
  0x2b   :  { %824 = shalt.err (!%p821_p5)
}
  0x2c   :  { %54 = dma.hbm_to_vmem [thread:$0]  %s1014_s2, 512, %s49_s24, [#allocation7], %s897_s14, %s897_s14, %s898_s15  }
  0x2d   :  { %s901_s29 = smov [#allocation11]   ;;  %s902_s10 = smov [#allocation12]  }
  0x2e   :  { %s72_s30 = sshll.u32 %s901_s29, 4  ;;  %s88_s11 = sshll.u32 %s902_s10, 4  ;;  %s73_s30 = int_to_ptr.vmem [resolvable:$true] %s72_s30  ;;  %s89_s11 = int_to_ptr.vmem [resolvable:$true] %s88_s11 }
  0x2f   :  { %s833_s0 = scalar_lea.vmem %s73_s30, 512  ;;  %p838_p7 = scmp.lt.s32.totalorder %s73_s30, %s73_s30 }
  0x30   :  { %p834_p6 = scmp.ne.s32.totalorder %s73_s30, %s833_s0  ;;  %p839_p8 = scmp.lt.s32.totalorder %s833_s0, %s833_s0 }
  0x32   :  { %p840_p9 = por %p839_p8, %p838_p7 }
  0x34   :  { %p841_p10 = pnand %p840_p9, %p834_p6 }
  0x36   :  { %844 = shalt.err (!%p841_p10)
}
  0x37   :  { %78 = dma.hbm_to_vmem [thread:$0]  %s1016_s4, 512, %s73_s30, [#allocation10], %s897_s14, %s897_s14, %s898_s15  }
  0x38   :  { %s853_s2 = scalar_lea.vmem %s89_s11, 2048  ;;  %p858_p12 = scmp.lt.s32.totalorder %s89_s11, %s89_s11 }
  0x39   :  { %p854_p11 = scmp.ne.s32.totalorder %s89_s11, %s853_s2  ;;  %p859_p13 = scmp.lt.s32.totalorder %s853_s2, %s853_s2 }
  0x3b   :  { %p860_p0 = por %p859_p13, %p858_p12 }
  0x3d   :  { %p861_p1 = pnand %p860_p0, %p854_p11 }
  0x3f   :  { %864 = shalt.err (!%p861_p1)
}
  0x40   :  { %94 = dma.hbm_to_vmem [thread:$0]  %s1019_s7, 2048, %s89_s11, [#allocation13], %s897_s14, %s897_s14, %s898_s15  }
  0x41   :  { %885 = dma.done.wait [#allocation4], 256  }
  0x42   :  { %886 = vsyncadd [#allocation4], 4294967040 }
  0x43   :  { %887 = dma.done.wait [#allocation7], 1024  }
  0x44   :  { %888 = vsyncadd [#allocation7], 4294966272 }
  0x45   :  { %889 = dma.done.wait [#allocation10], 1024  }
  0x46   :  { %890 = vsyncadd [#allocation10], 4294966272 }
  0x47   :  { %891 = dma.done.wait [#allocation13], 2048  }
  0x48   :  { %892 = vsyncadd [#allocation13], 4294965248  ;;  %vm125_vm0 = vcmask 261120   ;;  %v124_v0 = vld [vmem:[#allocation8 + $0x18] sm:$0xff]  ;;  %v123_v1 = vld [vmem:[#allocation8 + $0x10] sm:$0xff]  ;;  %v903_v18 = vmov 0.0   ;;  %v209_v38 = vlaneseq }
  0x49   :  { %655 = vmatprep.subr.mxu1 %v124_v0  ;;  %v115_v2 = vld [vmem:[#allocation3] sm:$0xff]  ;;  %v122_v3 = vld [vmem:[#allocation8 + $0x8] sm:$0xff]  ;;  %v121_v4 = vld [vmem:[#allocation8] sm:$0xff]  ;;  %699 = vmatprep.subr.mxu0 %v903_v18  ;;  %vm904_vm1 = vmmov 0   ;;  %vm478_vm5 = vcmask 1041409   ;;  %s905_s19 = smov [#allocation14]  }
  0x4a   :  { %656 = vmatpush3.msra.mxu1 %v124_v0  ;;  %663 = vmatprep.mubr.msk.f32.mxu1 %vm125_vm0, %v115_v2  ;;  %v116_v5 = vld [vmem:[#allocation3 + $0x8] sm:$0xff]  ;;  %v119_v7 = vld [vmem:[#allocation6 + $0x10] sm:$0xff]  ;;  %v118_v8 = vld [vmem:[#allocation6 + $0x8] sm:$0xff]  ;;  %v210_v41 = vshrl.u32 %v209_v38, 7  ;;  %s592_s20 = sshll.u32 %s905_s19, 4  ;;  %s593_s20 = int_to_ptr.vmem [resolvable:$true] %s592_s20 }
  0x4b   :  { %657 = vmatprep.subr.mxu1 %v123_v1  ;;  %v120_v6 = vld [vmem:[#allocation6 + $0x18] sm:$0xff]  ;;  %v117_v9 = vld [vmem:[#allocation6] sm:$0xff]  ;;  %v291_v11 = vld [vmem:[#allocation9 + $0x10] sm:$0xff]  ;;  %731 = vmatprep.mubr.msk.f32.mxu0 %vm904_vm1, %v903_v18  ;;  %s865_s21 = scalar_lea.vmem %s593_s20, 32  ;;  %p870_p3 = scmp.lt.s32.totalorder %s593_s20, %s593_s20 }
  0x4c   :  { %658 = vmatpush3.msra.mxu1 %v123_v1  ;;  %v292_v10 = vld [vmem:[#allocation9 + $0x18] sm:$0xff]  ;;  %v290_v12 = vld [vmem:[#allocation9 + $0x8] sm:$0xff]  ;;  %v289_v13 = vld [vmem:[#allocation9] sm:$0xff]  ;;  %vm211_vm2 = vcmp.lt.s32.totalorder %v210_v41, 7  ;;  %vm370_vm3 = vcmp.lt.s32.totalorder %v210_v41, 6  ;;  %vm456_vm4 = vcmp.lt.s32.totalorder %v210_v41, 5  ;;  %p866_p2 = scmp.ne.s32.totalorder %s593_s20, %s865_s21  ;;  %p871_p4 = scmp.lt.s32.totalorder %s865_s21, %s865_s21 }
  0x4d   :  { %659 = vmatprep.subr.mxu1 %v122_v3  ;;  %v378_v14 = vld [vmem:[#allocation11 + $0x18] sm:$0xff]  ;;  %v377_v15 = vld [vmem:[#allocation11 + $0x10] sm:$0xff]  ;;  %v376_v16 = vld [vmem:[#allocation11 + $0x8] sm:$0xff] }
  0x4e   :  { %660 = vmatpush3.msra.mxu1 %v122_v3  ;;  %v375_v17 = vld [vmem:[#allocation11] sm:$0xff]  ;;  %v507_v19 = vld [vmem:[#allocation12 + $0x78] sm:$0xff]  ;;  %v506_v20 = vld [vmem:[#allocation12 + $0x70] sm:$0xff]  ;;  %p872_p5 = por %p871_p4, %p870_p3 }
  0x4f   :  { %661 = vmatprep.subr.mxu1 %v121_v4  ;;  %700 = vmatpush3.msra.mxu0 %v507_v19  ;;  %v505_v21 = vld [vmem:[#allocation12 + $0x68] sm:$0xff]  ;;  %v504_v22 = vld [vmem:[#allocation12 + $0x60] sm:$0xff]  ;;  %v503_v23 = vld [vmem:[#allocation12 + $0x58] sm:$0xff] }
  0x50   :  { %662 = vmatpush3.msra.mxu1 %v121_v4  ;;  %701 = vmatprep.subr.mxu0 %v903_v18  ;;  %v502_v24 = vld [vmem:[#allocation12 + $0x50] sm:$0xff]  ;;  %v501_v25 = vld [vmem:[#allocation12 + $0x48] sm:$0xff]  ;;  %v500_v26 = vld [vmem:[#allocation12 + $0x40] sm:$0xff]  ;;  %p873_p6 = pnand %p872_p5, %p866_p2 }
  0x51   :  { %664 = vmatmul.mubr.msk.f32.vlgmr.msra.gmra.mxu1 %vm125_vm0, %v116_v5  ;;  %666 = vmatprep.subr.mxu1 %v120_v6  ;;  %v499_v27 = vld [vmem:[#allocation12 + $0x38] sm:$0xff]  ;;  %v498_v28 = vld [vmem:[#allocation12 + $0x30] sm:$0xff]  ;;  %v497_v29 = vld [vmem:[#allocation12 + $0x28] sm:$0xff] }
  0x52   :  { %667 = vmatpush3.msra.mxu1 %v120_v6  ;;  %674 = vmatprep.mubr.msk.f32.mxu1 %vm125_vm0, %v115_v2  ;;  %v496_v30 = vld [vmem:[#allocation12 + $0x20] sm:$0xff]  ;;  %v495_v31 = vld [vmem:[#allocation12 + $0x18] sm:$0xff]  ;;  %v494_v32 = vld [vmem:[#allocation12 + $0x10] sm:$0xff] }
  0x53   :  { %668 = vmatprep.subr.mxu1 %v119_v7  ;;  %702 = vmatpush3.msra.mxu0 %v506_v20  ;;  %v493_v33 = vld [vmem:[#allocation12 + $0x8] sm:$0xff]  ;;  %v492_v34 = vld [vmem:[#allocation12] sm:$0xff] }
  0x54   :  { %669 = vmatpush3.msra.mxu1 %v119_v7  ;;  %703 = vmatprep.subr.mxu0 %v903_v18  ;;  %v461_v61 = vld [vmem:[%s1018_s6] sm:$0xff] }
  0x55   :  { %670 = vmatprep.subr.mxu1 %v118_v8  ;;  %704 = vmatpush3.msra.mxu0 %v505_v21  ;;  %v613_v19 = vld [vmem:[%s1020_s8] ss:$0 sm:$0xff] }
  0x56   :  { %671 = vmatpush3.msra.mxu1 %v118_v8  ;;  %705 = vmatprep.subr.mxu0 %v903_v18 }
  0x57   :  { %672 = vmatprep.subr.mxu1 %v117_v9  ;;  %706 = vmatpush3.msra.mxu0 %v504_v22 }
  0x58   :  { %673 = vmatpush3.msra.mxu1 %v117_v9  ;;  %707 = vmatprep.subr.mxu0 %v903_v18 }
  0x59   :  { %675 = vmatmul.mubr.msk.f32.vlgmr.msra.gmra.mxu1 %vm125_vm0, %v116_v5  ;;  %677 = vmatprep.subr.mxu1 %v292_v10 }
  0x5a   :  { %678 = vmatpush3.msra.mxu1 %v292_v10  ;;  %685 = vmatprep.mubr.msk.f32.mxu1 %vm125_vm0, %v115_v2 }
  0x5b   :  { %679 = vmatprep.subr.mxu1 %v291_v11  ;;  %708 = vmatpush3.msra.mxu0 %v503_v23 }
  0x5c   :  { %680 = vmatpush3.msra.mxu1 %v291_v11  ;;  %709 = vmatprep.subr.mxu0 %v903_v18 }
  0x5d   :  { %681 = vmatprep.subr.mxu1 %v290_v12  ;;  %710 = vmatpush3.msra.mxu0 %v502_v24 }
  0x5e   :  { %682 = vmatpush3.msra.mxu1 %v290_v12  ;;  %711 = vmatprep.subr.mxu0 %v903_v18 }
  0x5f   :  { %683 = vmatprep.subr.mxu1 %v289_v13  ;;  %712 = vmatpush3.msra.mxu0 %v501_v25 }
  0x60   :  { %684 = vmatpush3.msra.mxu1 %v289_v13  ;;  %713 = vmatprep.subr.mxu0 %v903_v18 }
  0x61   :  { %686 = vmatmul.mubr.msk.f32.vlgmr.msra.gmra.mxu1 %vm125_vm0, %v116_v5  ;;  %688 = vmatprep.subr.mxu1 %v378_v14 }
  0x62   :  { %689 = vmatpush3.msra.mxu1 %v378_v14  ;;  %696 = vmatprep.mubr.msk.f32.mxu1 %vm125_vm0, %v115_v2 }
  0x63   :  { %690 = vmatprep.subr.mxu1 %v377_v15  ;;  %714 = vmatpush3.msra.mxu0 %v500_v26 }
  0x64   :  { %691 = vmatpush3.msra.mxu1 %v377_v15  ;;  %715 = vmatprep.subr.mxu0 %v903_v18  ;;  %v612_v15 = vld [vmem:[%s1017_s5] ss:$0 sm:$0xff] }
  0x65   :  { %692 = vmatprep.subr.mxu1 %v376_v16  ;;  %716 = vmatpush3.msra.mxu0 %v499_v27 }
  0x66   :  { %693 = vmatpush3.msra.mxu1 %v376_v16  ;;  %717 = vmatprep.subr.mxu0 %v903_v18 }
  0x67   :  { %694 = vmatprep.subr.mxu1 %v375_v17  ;;  %718 = vmatpush3.msra.mxu0 %v498_v28 }
  0x68   :  { %695 = vmatpush3.msra.mxu1 %v375_v17  ;;  %719 = vmatprep.subr.mxu0 %v903_v18 }
  0x69   :  { %697 = vmatmul.mubr.msk.f32.vlgmr.msra.gmra.mxu1 %vm125_vm0, %v116_v5  ;;  %720 = vmatpush3.msra.mxu0 %v497_v29 }
  0x6a   :  { %721 = vmatprep.subr.mxu0 %v903_v18 }
  0x6b   :  { %722 = vmatpush3.msra.mxu0 %v496_v30 }
  0x6c   :  { %723 = vmatprep.subr.mxu0 %v903_v18 }
  0x6d   :  { %724 = vmatpush3.msra.mxu0 %v495_v31 }
  0x6e   :  { %725 = vmatprep.subr.mxu0 %v903_v18 }
  0x6f   :  { %726 = vmatpush3.msra.mxu0 %v494_v32 }
  0x70   :  { %727 = vmatprep.subr.mxu0 %v903_v18 }
  0x71   :  { %728 = vmatpush3.msra.mxu0 %v493_v33 }
  0x72   :  { %729 = vmatprep.subr.mxu0 %v903_v18 }
  0x73   :  { %730 = vmatpush3.msra.mxu0 %v492_v34 }
 0x111   :  { %v665_v35 = vpop.f32.mrf.mxu1 }
 0x112   :  { %v208_v43 = vrot.slane %v665_v35, 1 }
 0x113   :  { %v198_v36 = vpop.f32.mrf.mxu1 }
 0x114   :  { %v207_v44 = vrot.slane %v198_v36, 1 }
 0x116   :  { %v213_v48 = vsel %vm211_vm2, %v208_v43, %v207_v44  ;;  %v212_v49 = vsel %vm211_vm2, %v207_v44, %v208_v43 }
 0x119   :  { %v676_v37 = vpop.f32.mrf.mxu1 }
 0x11a   :  { %v286_v52 = vadd.f32 %v676_v37, %v213_v48 }
 0x11b   :  { %v280_v39 = vpop.f32.mrf.mxu1 }
 0x11c   :  { %v281_v53 = vadd.f32 %v280_v39, %v212_v49 }
 0x121   :  { %v687_v40 = vpop.f32.mrf.mxu1 }
 0x122   :  { %v369_v45 = vrot.slane %v687_v40, 2 }
 0x123   :  { %v359_v42 = vpop.f32.mrf.mxu1 }
 0x124   :  { %v368_v46 = vrot.slane %v359_v42, 2 }
 0x126   :  { %v371_v50 = vsel %vm370_vm3, %v368_v46, %v369_v45  ;;  %v372_v51 = vsel %vm370_vm3, %v369_v45, %v368_v46 }
 0x127   :  { %v373_v57 = vadd.f32 %v371_v50, %v281_v53  ;;  %v374_v58 = vadd.f32 %v372_v51, %v286_v52 }
 0x129   :  { %v698_v47 = vpop.f32.mrf.mxu1 }
 0x12a   :  { %v455_v55 = vrot.slane %v698_v47, 3 }
 0x12b   :  { %v445_v54 = vpop.f32.mrf.mxu1 }
 0x12c   :  { %v454_v56 = vrot.slane %v445_v54, 3 }
 0x12e   :  { %v457_v59 = vsel %vm456_vm4, %v454_v56, %v455_v55  ;;  %v458_v60 = vsel %vm456_vm4, %v455_v55, %v454_v56 }
 0x12f   :  { %v459_v62 = vadd.f32 %v457_v59, %v373_v57  ;;  %v460_v63 = vadd.f32 %v458_v60, %v374_v58 }
 0x131   :  { %v462_v0 = vadd.f32 %v461_v61, %v459_v62  ;;  %v463_v1 = vadd.f32 %v461_v61, %v460_v63 }
 0x133   :  { %v464_v2 = vrot.slane %v462_v0, 4  ;;  %v470_v3 = vrot.slane %v463_v1, 4 }
 0x135   :  { %v465_v4 = vmax.f32 %v462_v0, %v464_v2  ;;  %v471_v5 = vmax.f32 %v463_v1, %v470_v3 }
 0x137   :  { %v466_v6 = vrot.slane %v465_v4, 2  ;;  %v472_v7 = vrot.slane %v471_v5, 2 }
 0x139   :  { %v467_v8 = vmax.f32 %v465_v4, %v466_v6  ;;  %v473_v9 = vmax.f32 %v471_v5, %v472_v7 }
 0x13b   :  { %v468_v10 = vrot.slane %v467_v8, 1  ;;  %v474_v11 = vrot.slane %v473_v9, 1 }
 0x13d   :  { %v469_v12 = vmax.f32 %v467_v8, %v468_v10  ;;  %v475_v13 = vmax.f32 %v473_v9, %v474_v11 }
 0x13f   :  { %v479_v14 = vsel %vm478_vm5, %v475_v13, %v469_v12 }
 0x140   :  { %481 = vst [vmem:[#allocation2] sm:$0x3] %v479_v14 }
 0x147   :  { %v482_v16 = vld [vmem:[#allocation2] sm:$0x3] }
 0x148   :  { %v490_v17 = vadd.f32 %v612_v15, %v482_v16 }
 0x14a   :  { %v491_v18 = vmax.f32 %v490_v17, 0.0 }
 0x14c   :  { %732 = vmatmul.mubr.f32.vlgmr.msra.gmra.mxu0 %v491_v18 }
 0x20c   :  { %v581_v20 = vpop.f32.mrf.mxu0 }
 0x20d   :  { %v582_v21 = vadd.f32 %v613_v19, %v581_v20 }
 0x20e   :  { %v733_v22 = vpop.f32.mrf.mxu0 }
 0x20f   :  { %585 = vst [vmem:[#allocation14] sm:$0x3] %v582_v21 }
 0x210   :  { %876 = shalt.err (!%p873_p6)
}
 0x211   :  { %595 = dma.vmem_to_hbm [thread:$0]  %s593_s20, 32, %s1021_s9, [#allocation5]  }
 0x212   :  { %893 = dma.done.wait [#allocation5], 32  }
 0x213   :  { %894 = vsyncadd [#allocation5], 4294967264 }
 0x214   :  { %599 = vsyncpa [#allocation4], 1 }
 0x215   :  { %600 = vsyncpa [#allocation7], 1 }
 0x216   :  { %601 = vsyncpa [#allocation10], 1 }
 0x217   :  { %602 = vsyncpa [#allocation13], 1 }
 0x218   :  { %603 = vsyncpa [#allocation5], 1 }

</bundles_post_ra>
